<compile_context>
chip_gen: v6e
topology: v6e:2x2x1
jax: 0.10.0
libtpu: 0.0.40
codegen_flags: <defaults>
</compile_context>

<pallas_src>
import jax
import jax.numpy as jnp
from jax.experimental import pallas as pl
from jax.experimental.pallas import tpu as pltpu

IN_FEATURES = 150
OUT_FEATURES = 3
TM_MAX = 8192  # max batch tile (rows per grid step)


def _round_up(x, m):
    return ((x + m - 1) // m) * m


def linear_kernel(x_ref, wt_ref, b_ref, o_ref):
    # x_ref: (TM, 150)  wt_ref: (150, 3)  b_ref: (1, 3)  o_ref: (TM, 3)
    acc = jnp.dot(x_ref[...], wt_ref[...], preferred_element_type=jnp.float32)
    o_ref[...] = (acc + b_ref[...]).astype(o_ref.dtype)


def _pick_tm(n, tm_max=TM_MAX):
    """Batch tile size.

    - Multiple of 8 (sublane alignment for the ragged last block).
    - Capped at TM_MAX so double-buffered VMEM stays ~TM*3 KiB (~24 MiB @ 8192).
    - At most ~half of N (rounded up) so the grid has >= 2 tiles whenever N > 8,
      keeping both v7x TensorCores fed via dimension_semantics=("parallel",).
    """
    half = _round_up(pl.cdiv(n, 2), 8)
    return max(8, min(tm_max, half))


def multi_classify_forward(x, weight, bias, tm=None):
    """Equivalent of torch.nn.Linear(150, 3): y = x @ weight.T + bias.

    x:      (N, 150) float32
    weight: (3, 150) float32   (PyTorch layout)
    bias:   (3,)     float32
    """
    n = x.shape[0]
    if tm is None:
        tm = _pick_tm(n)

    wt = weight.T                        # (150, 3)
    b2 = bias.reshape(1, OUT_FEATURES)   # (1, 3)

    grid = (pl.cdiv(n, tm),)             # ragged last block is masked by Pallas

    cost = pl.CostEstimate(
        flops=2 * n * IN_FEATURES * OUT_FEATURES,
        bytes_accessed=n * (IN_FEATURES + OUT_FEATURES) * 4
        + IN_FEATURES * OUT_FEATURES * 4
        + OUT_FEATURES * 4,
        transcendentals=0,
    )

    out = pl.pallas_call(
        linear_kernel,
        out_shape=jax.ShapeDtypeStruct((n, OUT_FEATURES), x.dtype),
        grid_spec=pltpu.PrefetchScalarGridSpec(
            num_scalar_prefetch=0,
            grid=grid,
            in_specs=[
                # Batch-tiled input: block (TM, 150); last dim equals the full
                # array dim, so the (8,128) rule is satisfied.
                pl.BlockSpec((tm, IN_FEATURES), lambda i: (i, 0)),
                # Weight & bias: same block every step -> stay resident in VMEM.
                pl.BlockSpec((IN_FEATURES, OUT_FEATURES), lambda i: (0, 0)),
                pl.BlockSpec((1, OUT_FEATURES), lambda i: (0, 0)),
            ],
            out_specs=pl.BlockSpec((tm, OUT_FEATURES), lambda i: (i, 0)),
        ),
        compiler_params=pltpu.CompilerParams(
            # Batch tiles are fully independent -> shard across TCs on v7x.
            dimension_semantics=("parallel",),
            # ~24 MiB double-buffered at TM=8192; raise the scoped limit so the
            # same tile size also works under v5e's 16 MiB default.
            vmem_limit_bytes=32 << 20,
        ),
        cost_estimate=cost,
    )(x, wt, b2)

    return out


if __name__ == "__main__":
    key = jax.random.PRNGKey(0)
    kx, kw, kb, kx2 = jax.random.split(key, 4)

    # Deterministic parameter init (mimics nn.Linear's uniform(-1/sqrt(fan_in), ...)).
    bound = 1.0 / (IN_FEATURES ** 0.5)
    weight = jax.random.uniform(
        kw, (OUT_FEATURES, IN_FEATURES), dtype=jnp.float32, minval=-bound, maxval=bound
    )
    bias = jax.random.uniform(
        kb, (OUT_FEATURES,), dtype=jnp.float32, minval=-bound, maxval=bound
    )

    # Small demo batch (single grid step).
    batch = 8
    x = jax.random.normal(kx, (batch, IN_FEATURES), dtype=jnp.float32)
    out = jax.block_until_ready(multi_classify_forward(x, weight, bias))
    ref = x @ weight.T + bias
    assert out.shape == (batch, OUT_FEATURES)
    assert jnp.allclose(out, ref, atol=1e-4, rtol=1e-4), "mismatch vs reference (small batch)"

    # Ragged batch exercising the multi-tile grid + masked last block (no pad/slice).
    batch2 = 1050
    x2 = jax.random.normal(kx2, (batch2, IN_FEATURES), dtype=jnp.float32)
    out2 = jax.block_until_ready(multi_classify_forward(x2, weight, bias))
    ref2 = x2 @ weight.T + bias
    assert out2.shape == (batch2, OUT_FEATURES)
    assert jnp.allclose(out2, ref2, atol=1e-4, rtol=1e-4), "mismatch vs reference (tiled batch)"

    print("KERNEL_OK")
</pallas_src>

<mosaic_0001>
module attributes {stable_mosaic.version = 11 : i64} {
  func.func @linear_kernel(%arg0: i32, %arg1: memref<8x150xf32, #tpu.memory_space<vmem>>, %arg2: memref<150x3xf32, #tpu.memory_space<vmem>>, %arg3: memref<1x3xf32, #tpu.memory_space<vmem>>, %arg4: memref<8x3xf32, #tpu.memory_space<vmem>>) attributes {dimension_semantics = [#tpu.dimension_semantics<parallel>], iteration_bounds = array<i64: 1>, scalar_prefetch = 0 : i64, scratch_operands = 0 : i64, tpu.core_type = #tpu.core_type<tc>, window_params = [{transform_indices = @transform_0, window_bounds = array<i64: 8, 150>}, {pipeline_mode = #tpu.pipeline_mode<synchronous>, transform_indices = @transform_1, window_bounds = array<i64: 150, 3>}, {pipeline_mode = #tpu.pipeline_mode<synchronous>, transform_indices = @transform_2, window_bounds = array<i64: 1, 3>}, {transform_indices = @transform_3, window_bounds = array<i64: 8, 3>}]} {
    %c0 = arith.constant 0 : index
    %c0_0 = arith.constant 0 : index
    %0 = vector.load %arg1[%c0, %c0_0] : memref<8x150xf32, #tpu.memory_space<vmem>>, vector<8x150xf32>
    %c0_1 = arith.constant 0 : index
    %c0_2 = arith.constant 0 : index
    %1 = vector.load %arg2[%c0_1, %c0_2] : memref<150x3xf32, #tpu.memory_space<vmem>>, vector<150x3xf32>
    %cst = arith.constant dense<0.000000e+00> : vector<8x3xf32>
    %2 = tpu.matmul %0, %1, %cst {dimension_numbers = #tpu.dot_dimension_numbers<[1], [0], [0], [1], [0, 0, 1, 1], [], []>} : vector<8x150xf32>, vector<150x3xf32>, vector<8x3xf32> -> vector<8x3xf32>
    %c0_3 = arith.constant 0 : index
    %c0_4 = arith.constant 0 : index
    %3 = vector.load %arg3[%c0_3, %c0_4] : memref<1x3xf32, #tpu.memory_space<vmem>>, vector<1x3xf32>
    %4 = vector.broadcast %3 : vector<1x3xf32> to vector<8x3xf32>
    %5 = arith.addf %2, %4 : vector<8x3xf32>
    %c0_5 = arith.constant 0 : index
    %c0_6 = arith.constant 0 : index
    %6 = vector.load %arg4[%c0_5, %c0_6] : memref<8x3xf32, #tpu.memory_space<vmem>>, vector<8x3xf32>
    tpu.vector_store %arg4[%c0_5, %c0_6], %5 {strides = array<i32>} : memref<8x3xf32, #tpu.memory_space<vmem>>, vector<8x3xf32>,
    return
  }
  func.func @transform_0(%arg0: i32) -> (i32, i32) {
    %c0_i32 = arith.constant 0 : i32
    %c0_i32_0 = arith.constant 0 : i32
    return %arg0, %c0_i32 : i32, i32
  }
  func.func @transform_1(%arg0: i32) -> (i32, i32) {
    %c0_i32 = arith.constant 0 : i32
    %c0_i32_0 = arith.constant 0 : i32
    %c0_i32_1 = arith.constant 0 : i32
    return %c0_i32, %c0_i32_0 : i32, i32
  }
  func.func @transform_2(%arg0: i32) -> (i32, i32) {
    %c0_i32 = arith.constant 0 : i32
    %c0_i32_0 = arith.constant 0 : i32
    %c0_i32_1 = arith.constant 0 : i32
    return %c0_i32, %c0_i32_0 : i32, i32
  }
  func.func @transform_3(%arg0: i32) -> (i32, i32) {
    %c0_i32 = arith.constant 0 : i32
    %c0_i32_0 = arith.constant 0 : i32
    return %arg0, %c0_i32 : i32, i32
  }
}

</mosaic_0001>

<bundles_post_ra>
// kernel: tpu_custom_call.1
= control target key start
LH: loop header
LB: loop body
LE: loop exit
PB: predicated region body
PF: predicated region fallthrough
CT: control target
= control target key end

     0   :  { %v130_v0 = vmov 0.0   ;;  %vm42_vm0 = vcmask 179200   ;;  %vm46_vm1 = vcmask 1045504   ;;  %vm120_vm2 = vcmask 23552   ;;  %s220_s1 = inlined_call_operand.vmem [shape: f32[150,3], index: 1, kind: input, shape index: {}]   ;;  %s221_s0 = inlined_call_operand.vmem [shape: f32[8,150], index: 0, kind: input, shape index: {}]   ;;  %s222_s2 = inlined_call_operand.vmem [shape: f32[1,3], index: 2, kind: input, shape index: {}]   ;;  %s223_s3 = inlined_call_operand.vmem [shape: f32[8,3], index: 3, kind: output, shape index: {}]  }
   0x1   :  { %50 = vmatprep.subr.mxu0 %v130_v0  ;;  %v31_v1 = vld [vmem:[%s220_s1 + $0x78] sm:$0xff]  ;;  %v30_v2 = vld [vmem:[%s220_s1 + $0x70] sm:$0xff]  ;;  %v29_v3 = vld [vmem:[%s220_s1 + $0x68] sm:$0xff] }
   0x2   :  { %51 = vmatpush1.msra.mxu0 %v31_v1  ;;  %v28_v4 = vld [vmem:[%s220_s1 + $0x60] sm:$0xff]  ;;  %v27_v5 = vld [vmem:[%s220_s1 + $0x58] sm:$0xff]  ;;  %v15_v6 = vld [vmem:[%s221_s0 + $0x8] sm:$0xff] }
   0x3   :  { %52 = vmatprep.subr.mxu0 %v130_v0  ;;  %128 = vmatprep.mubr.msk.f32.mxu0 %vm42_vm0, %v15_v6  ;;  %v26_v7 = vld [vmem:[%s220_s1 + $0x50] sm:$0xff]  ;;  %v25_v8 = vld [vmem:[%s220_s1 + $0x48] sm:$0xff]  ;;  %v24_v9 = vld [vmem:[%s220_s1 + $0x40] sm:$0xff] }
   0x4   :  { %53 = vmatpush1.msra.mxu0 %v30_v2  ;;  %v23_v10 = vld [vmem:[%s220_s1 + $0x38] sm:$0xff]  ;;  %v22_v11 = vld [vmem:[%s220_s1 + $0x30] sm:$0xff]  ;;  %v21_v12 = vld [vmem:[%s220_s1 + $0x28] sm:$0xff] }
   0x5   :  { %54 = vmatprep.subr.mxu0 %v130_v0  ;;  %v20_v13 = vld [vmem:[%s220_s1 + $0x20] sm:$0xff]  ;;  %v19_v14 = vld [vmem:[%s220_s1 + $0x18] sm:$0xff]  ;;  %v18_v15 = vld [vmem:[%s220_s1 + $0x10] sm:$0xff] }
   0x6   :  { %55 = vmatpush1.msra.mxu0 %v29_v3  ;;  %v17_v16 = vld [vmem:[%s220_s1 + $0x8] sm:$0xff]  ;;  %v16_v17 = vld [vmem:[%s220_s1] sm:$0xff]  ;;  %v34_v18 = vld [vmem:[%s220_s1 + $0x90] sm:$0x3f] }
   0x7   :  { %56 = vmatprep.subr.mxu0 %v130_v0  ;;  %v33_v19 = vld [vmem:[%s220_s1 + $0x88] sm:$0xff]  ;;  %v32_v20 = vld [vmem:[%s220_s1 + $0x80] sm:$0xff] }
   0x8   :  { %57 = vmatpush1.msra.mxu0 %v28_v4  ;;  %v14_v21 = vld [vmem:[%s221_s0] sm:$0xff] }
   0x9   :  { %58 = vmatprep.subr.mxu0 %v130_v0  ;;  %v126_v22 = vld [vmem:[%s222_s2] ss:$0 sm:$0xff] }
   0xa   :  { %59 = vmatpush1.msra.mxu0 %v27_v5 }
   0xb   :  { %60 = vmatprep.subr.mxu0 %v130_v0 }
   0xc   :  { %61 = vmatpush1.msra.mxu0 %v26_v7 }
   0xd   :  { %62 = vmatprep.subr.mxu0 %v130_v0 }
   0xe   :  { %63 = vmatpush1.msra.mxu0 %v25_v8 }
   0xf   :  { %64 = vmatprep.subr.mxu0 %v130_v0 }
  0x10   :  { %65 = vmatpush1.msra.mxu0 %v24_v9 }
  0x11   :  { %66 = vmatprep.subr.mxu0 %v130_v0 }
  0x12   :  { %67 = vmatpush1.msra.mxu0 %v23_v10 }
  0x13   :  { %68 = vmatprep.subr.mxu0 %v130_v0 }
  0x14   :  { %69 = vmatpush1.msra.mxu0 %v22_v11 }
  0x15   :  { %70 = vmatprep.subr.mxu0 %v130_v0 }
  0x16   :  { %71 = vmatpush1.msra.mxu0 %v21_v12 }
  0x17   :  { %72 = vmatprep.subr.mxu0 %v130_v0 }
  0x18   :  { %73 = vmatpush1.msra.mxu0 %v20_v13 }
  0x19   :  { %74 = vmatprep.subr.mxu0 %v130_v0 }
  0x1a   :  { %75 = vmatpush1.msra.mxu0 %v19_v14 }
  0x1b   :  { %76 = vmatprep.subr.mxu0 %v130_v0 }
  0x1c   :  { %77 = vmatpush1.msra.mxu0 %v18_v15 }
  0x1d   :  { %78 = vmatprep.subr.mxu0 %v130_v0 }
  0x1e   :  { %79 = vmatpush1.msra.mxu0 %v17_v16 }
  0x1f   :  { %80 = vmatprep.subr.mxu0 %v130_v0 }
  0x20   :  { %81 = vmatpush1.msra.mxu0 %v16_v17 }
  0x21   :  { %108 = vmatprep.subr.mxu0 %v130_v0 }
  0x22   :  { %127 = vmatpush2.msk.msra.mxu0 %vm46_vm1, %v34_v18 }
  0x23   :  { %110 = vmatprep.subr.mxu0 %v130_v0 }
  0x24   :  { %111 = vmatpush2.msra.mxu0 %v33_v19 }
  0x25   :  { %112 = vmatprep.subr.mxu0 %v130_v0 }
  0x26   :  { %113 = vmatpush2.msra.mxu0 %v32_v20 }
  0x27   :  { %115 = vmatmul.mubr.f32.vlgmr.msra.gmra.mxu0 %v14_v21 }
  0xe7   :  { %v116_v23 = vpop.f32.mrf.mxu0 }
  0xe8   :  { %v117_v24 = vadd.f32 %v126_v22, %v116_v23 }
  0xe9   :  { %v118_v25 = vpop.f32.mrf.mxu0 }
  0xea   :  { %121 = vst.msk [vmem:[%s223_s3] sm:$0xff] %vm120_vm2, %v117_v24 }

</bundles_post_ra>
